<compile_context>
chip_gen: v5e
topology: v5e:2x2
jax: 0.10.0
libtpu: 0.0.40
codegen_flags: <defaults>
</compile_context>

<pallas_src>
import math
import functools

import jax
import jax.numpy as jnp
from jax.experimental import pallas as pl
from jax.experimental.pallas import tpu as pltpu


def _pick_tile(n, cap=128):
    """Largest tile <= cap that divides n and is a multiple of 8 (else n)."""
    if n <= cap:
        return n
    for t in range(cap, 7, -8):
        if n % t == 0:
            return t
    return n


def _vmem_limit(nbytes):
    """2x headroom over the static estimate, clamped to [32 MiB, 64 MiB]."""
    return int(min(max(2 * nbytes, 32 * 1024 * 1024), 64 * 1024 * 1024))


# ---------------------------------------------------------------------------
# Kernel 1: QKV projections (1/sqrt(d_k) pre-folded into the q weights/bias),
#           bf16 outputs.
# ---------------------------------------------------------------------------
def _qkv_proj_kernel(xq_ref, xk_ref, xv_ref, w_ref, b_ref,
                     qo_ref, ko_ref, vo_ref):
    def proj(x_ref, idx):
        x = x_ref[0].astype(jnp.bfloat16)                         # (TS, D)
        y = jnp.dot(x, w_ref[idx], preferred_element_type=jnp.float32)
        return y + b_ref[idx]                                     # f32 (TS, D)

    qo_ref[0] = proj(xq_ref, 0).astype(jnp.bfloat16)
    ko_ref[0] = proj(xk_ref, 1).astype(jnp.bfloat16)
    vo_ref[0] = proj(xv_ref, 2).astype(jnp.bfloat16)


# ---------------------------------------------------------------------------
# Kernel 2: per-(batch, query-block) attention + output projection.
# ---------------------------------------------------------------------------
def _attn_kernel(*refs, h, d_k, has_mask):
    if has_mask:
        q_ref, k_ref, v_ref, m_ref, wo_ref, bo_ref, o_ref, ctx_ref = refs
    else:
        q_ref, k_ref, v_ref, wo_ref, bo_ref, o_ref, ctx_ref = refs
        m_ref = None

    q = q_ref[0]                         # (TQ, D) bf16, already scaled
    k = k_ref[0]                         # (S,  D) bf16
    v = v_ref[0]                         # (S,  D) bf16

    if has_mask:
        # int8 -> f32 once; the compare is hoisted out of the head loop.
        is_masked = m_ref[0].astype(jnp.float32) == 0.0           # (TQ, S)

    for head in range(h):                # static unroll over heads
        lo = head * d_k
        q_h = q[:, lo:lo + d_k]          # (TQ, d_k) bf16
        k_h = k[:, lo:lo + d_k]          # (S,  d_k) bf16
        v_h = v[:, lo:lo + d_k]          # (S,  d_k) bf16

        # scores (TQ, S): contract over d_k, keep S on the lane axis.
        s_h = jax.lax.dot_general(
            q_h, k_h, (((1,), (1,)), ((), ())),
            preferred_element_type=jnp.float32)
        if has_mask:
            s_h = jnp.where(is_masked, -1e9, s_h)

        m_h = jnp.max(s_h, axis=-1, keepdims=True)                # (TQ, 1)
        p_h = jnp.exp(s_h - m_h)                                  # f32 (TQ, S)
        denom = jnp.sum(p_h, axis=-1, keepdims=True)              # (TQ, 1)

        # (attention dropout = identity in eval mode)

        ctx_h = jnp.dot(p_h.astype(jnp.bfloat16), v_h,
                        preferred_element_type=jnp.float32)       # (TQ, d_k)
        # Normalize after attn@V: O(TQ*d_k) multiply + EUP reciprocal.
        ctx_h = ctx_h * pl.reciprocal(denom, approx=True)
        ctx_ref[:, lo:lo + d_k] = ctx_h  # pack heads lane-dense into (TQ, D)

    ctx = ctx_ref[...].astype(jnp.bfloat16)                       # (TQ, D)
    out = jnp.dot(ctx, wo_ref[...], preferred_element_type=jnp.float32)
    out = out + bo_ref[...]
    o_ref[0] = out.astype(o_ref.dtype)


# ---------------------------------------------------------------------------
# Wrapper
# ---------------------------------------------------------------------------
def multi_headed_attention(query, key, value, params, *, h, mask=None):
    """query/key/value: [B, S, D] float32. params: dict of weights/biases."""
    B, S, D = query.shape
    assert D % h == 0
    d_k = D // h
    f32, bf16 = jnp.float32, jnp.bfloat16

    # Fold 1/sqrt(d_k) into the q projection (host-side, avoids any in-kernel
    # captured scalar and one VPU multiply per element), then pack the three
    # projection weights/biases into single tensors (one DMA stream).
    scale = 1.0 / math.sqrt(d_k)
    w_qkv = jnp.stack([params['wq'] * scale,
                       params['wk'],
                       params['wv']]).astype(bf16)
    b_qkv = jnp.stack([params['bq'] * scale,
                       params['bk'],
                       params['bv']]).reshape(3, 1, D).astype(f32)
    wo = params['wo'].astype(bf16)
    bo = params['bo'].reshape(1, D).astype(f32)

    TS = _pick_tile(S, cap=256)   # projection row tile
    TQ = _pick_tile(S, cap=128)   # attention query tile

    # ---------------- Kernel 1: QKV projection ----------------
    x_spec = pl.BlockSpec((1, TS, D), lambda b, s: (b, s, 0))
    w_spec = pl.BlockSpec((3, D, D), lambda b, s: (0, 0, 0))
    b_spec = pl.BlockSpec((3, 1, D), lambda b, s: (0, 0, 0))
    po_spec = pl.BlockSpec((1, TS, D), lambda b, s: (b, s, 0))

    vmem_a = _vmem_limit(3 * 2 * TS * D * 4              # f32 inputs (dbl-buf)
                         + 2 * (3 * D * D * 2 + 3 * D * 4)  # packed w/b
                         + 3 * 2 * TS * D * 2)            # bf16 outputs

    q_p, k_p, v_p = pl.pallas_call(
        _qkv_proj_kernel,
        out_shape=tuple(jax.ShapeDtypeStruct((B, S, D), bf16) for _ in range(3)),
        grid_spec=pltpu.PrefetchScalarGridSpec(
            num_scalar_prefetch=0,
            grid=(B, S // TS),
            in_specs=[x_spec, x_spec, x_spec, w_spec, b_spec],
            out_specs=[po_spec, po_spec, po_spec],
        ),
        compiler_params=pltpu.CompilerParams(
            dimension_semantics=("parallel", "parallel"),
            vmem_limit_bytes=vmem_a),
    )(query, key, value, w_qkv, b_qkv)

    # ---------------- Kernel 2: attention + output projection ----------------
    qb_spec = pl.BlockSpec((1, TQ, D), lambda b, qi: (b, qi, 0))
    kv_spec = pl.BlockSpec((1, S, D), lambda b, qi: (b, 0, 0))
    wo_spec = pl.BlockSpec((D, D), lambda b, qi: (0, 0))
    bo_spec = pl.BlockSpec((1, D), lambda b, qi: (0, 0))
    ob_spec = pl.BlockSpec((1, TQ, D), lambda b, qi: (b, qi, 0))

    has_mask = mask is not None
    in_specs = [qb_spec, kv_spec, kv_spec]
    args = [q_p, k_p, v_p]
    if has_mask:
        mask_i8 = jnp.broadcast_to(mask != 0, (B, S, S)).astype(jnp.int8)
        in_specs.append(pl.BlockSpec((1, TQ, S), lambda b, qi: (b, qi, 0)))
        args.append(mask_i8)
    in_specs += [wo_spec, bo_spec]
    args += [wo, bo]

    vmem_b = _vmem_limit(2 * TQ * D * 2              # q block (bf16, dbl-buf)
                         + 2 * 2 * S * D * 2         # k, v blocks
                         + 2 * TQ * S                # int8 mask block
                         + 2 * (D * D * 2 + D * 4)   # wo / bo
                         + 2 * TQ * D * 4            # output block
                         + TQ * D * 4                # ctx scratch
                         + 6 * TQ * S * 4)           # in-flight f32 score tiles

    kernel = functools.partial(_attn_kernel, h=h, d_k=d_k, has_mask=has_mask)
    out = pl.pallas_call(
        kernel,
        out_shape=jax.ShapeDtypeStruct((B, S, D), query.dtype),
        grid_spec=pltpu.PrefetchScalarGridSpec(
            num_scalar_prefetch=0,
            grid=(B, S // TQ),
            in_specs=in_specs,
            out_specs=ob_spec,
            scratch_shapes=[pltpu.VMEM((TQ, D), jnp.float32)],
        ),
        compiler_params=pltpu.CompilerParams(
            dimension_semantics=("parallel", "parallel"),
            vmem_limit_bytes=vmem_b),
    )(*args)
    return out


# ---------------------------------------------------------------------------
# Pure-JAX reference (f32), matching the PyTorch forward in eval mode.
# ---------------------------------------------------------------------------
def _reference(query, key, value, params, *, h, mask=None):
    B, S, D = query.shape
    d_k = D // h

    def proj(x, w, b):
        return x @ w + b

    q = proj(query, params['wq'], params['bq']).reshape(B, S, h, d_k).transpose(0, 2, 1, 3)
    k = proj(key,   params['wk'], params['bk']).reshape(B, S, h, d_k).transpose(0, 2, 1, 3)
    v = proj(value, params['wv'], params['bv']).reshape(B, S, h, d_k).transpose(0, 2, 1, 3)

    scores = jnp.einsum('bhqd,bhkd->bhqk', q, k) / math.sqrt(d_k)
    if mask is not None:
        scores = jnp.where(mask[:, None, :, :] == 0, -1e9, scores)
    attn = jax.nn.softmax(scores, axis=-1)
    x = jnp.einsum('bhqk,bhkd->bhqd', attn, v)
    x = x.transpose(0, 2, 1, 3).reshape(B, S, D)
    return x @ params['wo'] + params['bo']


if __name__ == "__main__":
    B, S, D, H = 2, 8, 32, 4   # batch, seq, d_model, heads (d_k = 8)

    key = jax.random.PRNGKey(0)
    ks = jax.random.split(key, 12)

    bound = 1.0 / math.sqrt(D)  # same scale as nn.Linear default init
    params = {
        'wq': jax.random.uniform(ks[0], (D, D), jnp.float32, -bound, bound),
        'bq': jax.random.uniform(ks[1], (D,), jnp.float32, -bound, bound),
        'wk': jax.random.uniform(ks[2], (D, D), jnp.float32, -bound, bound),
        'bk': jax.random.uniform(ks[3], (D,), jnp.float32, -bound, bound),
        'wv': jax.random.uniform(ks[4], (D, D), jnp.float32, -bound, bound),
        'bv': jax.random.uniform(ks[5], (D,), jnp.float32, -bound, bound),
        'wo': jax.random.uniform(ks[6], (D, D), jnp.float32, -bound, bound),
        'bo': jax.random.uniform(ks[7], (D,), jnp.float32, -bound, bound),
    }

    query = jax.random.normal(ks[8], (B, S, D), jnp.float32)
    key_x = jax.random.normal(ks[9], (B, S, D), jnp.float32)
    value = jax.random.normal(ks[10], (B, S, D), jnp.float32)

    # Causal-ish example mask (1 = keep, 0 = mask out), shape [B, S, S].
    mask = jnp.tril(jnp.ones((S, S), jnp.float32))[None].repeat(B, axis=0)

    out = multi_headed_attention(query, key_x, value, params, h=H, mask=mask)
    out = jax.block_until_ready(out)
    ref = _reference(query, key_x, value, params, h=H, mask=mask)
    assert out.shape == (B, S, D)
    # bf16 MXU operands -> looser tolerance than a pure-f32 kernel.
    assert jnp.allclose(out, ref, atol=5e-2, rtol=5e-2), "mismatch vs reference"

    # Also check the mask=None path (mask is skipped entirely in that kernel).
    out2 = jax.block_until_ready(
        multi_headed_attention(query, key_x, value, params, h=H, mask=None))
    ref2 = _reference(query, key_x, value, params, h=H, mask=None)
    assert jnp.allclose(out2, ref2, atol=5e-2, rtol=5e-2), "mismatch (no mask)"

    print("KERNEL_OK")
</pallas_src>

<mosaic_0001>
module attributes {stable_mosaic.version = 11 : i64} {
  func.func @_qkv_proj_kernel(%arg0: i32, %arg1: i32, %arg2: memref<1x8x32xf32, #tpu.memory_space<vmem>>, %arg3: memref<1x8x32xf32, #tpu.memory_space<vmem>>, %arg4: memref<1x8x32xf32, #tpu.memory_space<vmem>>, %arg5: memref<3x32x32xbf16, #tpu.memory_space<vmem>>, %arg6: memref<3x1x32xf32, #tpu.memory_space<vmem>>, %arg7: memref<1x8x32xbf16, #tpu.memory_space<vmem>>, %arg8: memref<1x8x32xbf16, #tpu.memory_space<vmem>>, %arg9: memref<1x8x32xbf16, #tpu.memory_space<vmem>>) attributes {dimension_semantics = [#tpu.dimension_semantics<parallel>, #tpu.dimension_semantics<parallel>], iteration_bounds = array<i64: 2, 1>, scalar_prefetch = 0 : i64, scratch_operands = 0 : i64, tpu.core_type = #tpu.core_type<tc>, window_params = [{transform_indices = @transform_0, window_bounds = array<i64: 1, 8, 32>}, {transform_indices = @transform_1, window_bounds = array<i64: 1, 8, 32>}, {transform_indices = @transform_2, window_bounds = array<i64: 1, 8, 32>}, {pipeline_mode = #tpu.pipeline_mode<synchronous>, transform_indices = @transform_3, window_bounds = array<i64: 3, 32, 32>}, {pipeline_mode = #tpu.pipeline_mode<synchronous>, transform_indices = @transform_4, window_bounds = array<i64: 3, 1, 32>}, {transform_indices = @transform_5, window_bounds = array<i64: 1, 8, 32>}, {transform_indices = @transform_6, window_bounds = array<i64: 1, 8, 32>}, {transform_indices = @transform_7, window_bounds = array<i64: 1, 8, 32>}]} {
    %c0 = arith.constant 0 : index
    %c0_0 = arith.constant 0 : index
    %c0_1 = arith.constant 0 : index
    %0 = vector.load %arg2[%c0, %c0_0, %c0_1] : memref<1x8x32xf32, #tpu.memory_space<vmem>>, vector<1x8x32xf32>
    %1 = vector.shape_cast %0 : vector<1x8x32xf32> to vector<8x32xf32>
    %2 = arith.truncf %1 : vector<8x32xf32> to vector<8x32xbf16>
    %c0_2 = arith.constant 0 : index
    %c0_3 = arith.constant 0 : index
    %c0_4 = arith.constant 0 : index
    %3 = vector.load %arg5[%c0_2, %c0_3, %c0_4] : memref<3x32x32xbf16, #tpu.memory_space<vmem>>, vector<1x32x32xbf16>
    %4 = vector.shape_cast %3 : vector<1x32x32xbf16> to vector<32x32xbf16>
    %cst = arith.constant dense<0.000000e+00> : vector<8x32xf32>
    %5 = tpu.matmul %2, %4, %cst {dimension_numbers = #tpu.dot_dimension_numbers<[1], [0], [0], [1], [0, 0, 1, 1], [], []>} : vector<8x32xbf16>, vector<32x32xbf16>, vector<8x32xf32> -> vector<8x32xf32>
    %c0_5 = arith.constant 0 : index
    %c0_6 = arith.constant 0 : index
    %c0_7 = arith.constant 0 : index
    %6 = vector.load %arg6[%c0_5, %c0_6, %c0_7] : memref<3x1x32xf32, #tpu.memory_space<vmem>>, vector<1x1x32xf32>
    %7 = vector.shape_cast %6 : vector<1x1x32xf32> to vector<1x32xf32>
    %8 = vector.broadcast %7 : vector<1x32xf32> to vector<8x32xf32>
    %9 = arith.addf %5, %8 : vector<8x32xf32>
    %10 = arith.truncf %9 : vector<8x32xf32> to vector<8x32xbf16>
    %c0_8 = arith.constant 0 : index
    %c0_9 = arith.constant 0 : index
    %c0_10 = arith.constant 0 : index
    %11 = vector.load %arg7[%c0_8, %c0_9, %c0_10] : memref<1x8x32xbf16, #tpu.memory_space<vmem>>, vector<1x8x32xbf16>
    %12 = vector.shape_cast %11 : vector<1x8x32xbf16> to vector<8x32xbf16>
    %13 = vector.shape_cast %10 : vector<8x32xbf16> to vector<1x8x32xbf16>
    tpu.vector_store %arg7[%c0_8, %c0_9, %c0_10], %13 {strides = array<i32>} : memref<1x8x32xbf16, #tpu.memory_space<vmem>>, vector<1x8x32xbf16>,
    %c0_11 = arith.constant 0 : index
    %c0_12 = arith.constant 0 : index
    %c0_13 = arith.constant 0 : index
    %14 = vector.load %arg3[%c0_11, %c0_12, %c0_13] : memref<1x8x32xf32, #tpu.memory_space<vmem>>, vector<1x8x32xf32>
    %15 = vector.shape_cast %14 : vector<1x8x32xf32> to vector<8x32xf32>
    %16 = arith.truncf %15 : vector<8x32xf32> to vector<8x32xbf16>
    %c1 = arith.constant 1 : index
    %c0_14 = arith.constant 0 : index
    %c0_15 = arith.constant 0 : index
    %17 = vector.load %arg5[%c1, %c0_14, %c0_15] : memref<3x32x32xbf16, #tpu.memory_space<vmem>>, vector<1x32x32xbf16>
    %18 = vector.shape_cast %17 : vector<1x32x32xbf16> to vector<32x32xbf16>
    %cst_16 = arith.constant dense<0.000000e+00> : vector<8x32xf32>
    %19 = tpu.matmul %16, %18, %cst_16 {dimension_numbers = #tpu.dot_dimension_numbers<[1], [0], [0], [1], [0, 0, 1, 1], [], []>} : vector<8x32xbf16>, vector<32x32xbf16>, vector<8x32xf32> -> vector<8x32xf32>
    %c1_17 = arith.constant 1 : index
    %c0_18 = arith.constant 0 : index
    %c0_19 = arith.constant 0 : index
    %20 = vector.load %arg6[%c1_17, %c0_18, %c0_19] : memref<3x1x32xf32, #tpu.memory_space<vmem>>, vector<1x1x32xf32>
    %21 = vector.shape_cast %20 : vector<1x1x32xf32> to vector<1x32xf32>
    %22 = vector.broadcast %21 : vector<1x32xf32> to vector<8x32xf32>
    %23 = arith.addf %19, %22 : vector<8x32xf32>
    %24 = arith.truncf %23 : vector<8x32xf32> to vector<8x32xbf16>
    %c0_20 = arith.constant 0 : index
    %c0_21 = arith.constant 0 : index
    %c0_22 = arith.constant 0 : index
    %25 = vector.load %arg8[%c0_20, %c0_21, %c0_22] : memref<1x8x32xbf16, #tpu.memory_space<vmem>>, vector<1x8x32xbf16>
    %26 = vector.shape_cast %25 : vector<1x8x32xbf16> to vector<8x32xbf16>
    %27 = vector.shape_cast %24 : vector<8x32xbf16> to vector<1x8x32xbf16>
    tpu.vector_store %arg8[%c0_20, %c0_21, %c0_22], %27 {strides = array<i32>} : memref<1x8x32xbf16, #tpu.memory_space<vmem>>, vector<1x8x32xbf16>,
    %c0_23 = arith.constant 0 : index
    %c0_24 = arith.constant 0 : index
    %c0_25 = arith.constant 0 : index
    %28 = vector.load %arg4[%c0_23, %c0_24, %c0_25] : memref<1x8x32xf32, #tpu.memory_space<vmem>>, vector<1x8x32xf32>
    %29 = vector.shape_cast %28 : vector<1x8x32xf32> to vector<8x32xf32>
    %30 = arith.truncf %29 : vector<8x32xf32> to vector<8x32xbf16>
    %c2 = arith.constant 2 : index
    %c0_26 = arith.constant 0 : index
    %c0_27 = arith.constant 0 : index
    %31 = vector.load %arg5[%c2, %c0_26, %c0_27] : memref<3x32x32xbf16, #tpu.memory_space<vmem>>, vector<1x32x32xbf16>
    %32 = vector.shape_cast %31 : vector<1x32x32xbf16> to vector<32x32xbf16>
    %cst_28 = arith.constant dense<0.000000e+00> : vector<8x32xf32>
    %33 = tpu.matmul %30, %32, %cst_28 {dimension_numbers = #tpu.dot_dimension_numbers<[1], [0], [0], [1], [0, 0, 1, 1], [], []>} : vector<8x32xbf16>, vector<32x32xbf16>, vector<8x32xf32> -> vector<8x32xf32>
    %c2_29 = arith.constant 2 : index
    %c0_30 = arith.constant 0 : index
    %c0_31 = arith.constant 0 : index
    %34 = vector.load %arg6[%c2_29, %c0_30, %c0_31] : memref<3x1x32xf32, #tpu.memory_space<vmem>>, vector<1x1x32xf32>
    %35 = vector.shape_cast %34 : vector<1x1x32xf32> to vector<1x32xf32>
    %36 = vector.broadcast %35 : vector<1x32xf32> to vector<8x32xf32>
    %37 = arith.addf %33, %36 : vector<8x32xf32>
    %38 = arith.truncf %37 : vector<8x32xf32> to vector<8x32xbf16>
    %c0_32 = arith.constant 0 : index
    %c0_33 = arith.constant 0 : index
    %c0_34 = arith.constant 0 : index
    %39 = vector.load %arg9[%c0_32, %c0_33, %c0_34] : memref<1x8x32xbf16, #tpu.memory_space<vmem>>, vector<1x8x32xbf16>
    %40 = vector.shape_cast %39 : vector<1x8x32xbf16> to vector<8x32xbf16>
    %41 = vector.shape_cast %38 : vector<8x32xbf16> to vector<1x8x32xbf16>
    tpu.vector_store %arg9[%c0_32, %c0_33, %c0_34], %41 {strides = array<i32>} : memref<1x8x32xbf16, #tpu.memory_space<vmem>>, vector<1x8x32xbf16>,
    return
  }
  func.func @transform_0(%arg0: i32, %arg1: i32) -> (i32, i32, i32) {
    %c0_i32 = arith.constant 0 : i32
    %c0_i32_0 = arith.constant 0 : i32
    return %arg0, %arg1, %c0_i32 : i32, i32, i32
  }
  func.func @transform_1(%arg0: i32, %arg1: i32) -> (i32, i32, i32) {
    %c0_i32 = arith.constant 0 : i32
    %c0_i32_0 = arith.constant 0 : i32
    return %arg0, %arg1, %c0_i32 : i32, i32, i32
  }
  func.func @transform_2(%arg0: i32, %arg1: i32) -> (i32, i32, i32) {
    %c0_i32 = arith.constant 0 : i32
    %c0_i32_0 = arith.constant 0 : i32
    return %arg0, %arg1, %c0_i32 : i32, i32, i32
  }
  func.func @transform_3(%arg0: i32, %arg1: i32) -> (i32, i32, i32) {
    %c0_i32 = arith.constant 0 : i32
    %c0_i32_0 = arith.constant 0 : i32
    %c0_i32_1 = arith.constant 0 : i32
    %c0_i32_2 = arith.constant 0 : i32
    return %c0_i32, %c0_i32_0, %c0_i32_1 : i32, i32, i32
  }
  func.func @transform_4(%arg0: i32, %arg1: i32) -> (i32, i32, i32) {
    %c0_i32 = arith.constant 0 : i32
    %c0_i32_0 = arith.constant 0 : i32
    %c0_i32_1 = arith.constant 0 : i32
    %c0_i32_2 = arith.constant 0 : i32
    return %c0_i32, %c0_i32_0, %c0_i32_1 : i32, i32, i32
  }
  func.func @transform_5(%arg0: i32, %arg1: i32) -> (i32, i32, i32) {
    %c0_i32 = arith.constant 0 : i32
    %c0_i32_0 = arith.constant 0 : i32
    return %arg0, %arg1, %c0_i32 : i32, i32, i32
  }
  func.func @transform_6(%arg0: i32, %arg1: i32) -> (i32, i32, i32) {
    %c0_i32 = arith.constant 0 : i32
    %c0_i32_0 = arith.constant 0 : i32
    return %arg0, %arg1, %c0_i32 : i32, i32, i32
  }
  func.func @transform_7(%arg0: i32, %arg1: i32) -> (i32, i32, i32) {
    %c0_i32 = arith.constant 0 : i32
    %c0_i32_0 = arith.constant 0 : i32
    return %arg0, %arg1, %c0_i32 : i32, i32, i32
  }
}

</mosaic_0001>

<bundles_post_ra>
// kernel: tpu_custom_call.1
= control target key start
LH: loop header
LB: loop body
LE: loop exit
PB: predicated region body
PF: predicated region fallthrough
CT: control target
= control target key end

     0   :  { %s1571_s0 = inlined_call_operand.hbm [shape: f32[2,8,32], index: 0, kind: input, shape index: {}]   ;;  %s1572_s1 = inlined_call_operand.hbm [shape: f32[2,8,32], index: 1, kind: input, shape index: {}]   ;;  %s1573_s2 = inlined_call_operand.hbm [shape: f32[2,8,32], index: 2, kind: input, shape index: {}]   ;;  %s1574_s3 = inlined_call_operand.hbm [shape: bf16[3,32,32], index: 3, kind: input, shape index: {}]   ;;  %s1575_s4 = inlined_call_operand.vmem [shape: f32[3,1,32], index: 4, kind: input, shape index: {}]   ;;  %s1576_s5 = inlined_call_operand.hbm [shape: bf16[2,8,32], index: 5, kind: output, shape index: {0}]   ;;  %s1577_s6 = inlined_call_operand.hbm [shape: bf16[2,8,32], index: 6, kind: output, shape index: {1}]   ;;  %s1578_s7 = inlined_call_operand.hbm [shape: bf16[2,8,32], index: 7, kind: output, shape index: {2}]  }
   0x1   :  { %1589 = sst [smem:[#allocation26_spill]] %s1572_s1 }
   0x2   :  { %1590 = sst [smem:[#allocation27_spill]] %s1574_s3 }
   0x3   :  { %13 = vsyncpa [#allocation3], 0 }
   0x4   :  { %15 = vsyncpa [#allocation3 + $0x1], 0 }
   0x5   :  { %16 = vsyncpa [#allocation6], 0 }
   0x6   :  { %18 = vsyncpa [#allocation6 + $0x1], 0 }
   0x7   :  { %19 = vsyncpa [#allocation9], 0 }
   0x8   :  { %20 = vsyncpa [#allocation4], 0 }
   0x9   :  { %22 = vsyncpa [#allocation4 + $0x1], 0 }
   0xa   :  { %23 = vsyncpa [#allocation12], 0 }
   0xb   :  { %25 = vsyncpa [#allocation12 + $0x1], 0  ;;  %s1292_s24 = smov 0   ;;  %s1294_s25 = smov 0  }
   0xc   :  { %s1296_s26 = smov 0   ;;  %s1298_s27 = smov 0  }
   0xd   :  { %s1300_s28 = smov 0   ;;  %s1302_s29 = smov 0  }
   0xe LB: > { %1591 = sst [smem:[#allocation19_spill]] %s1227_s24  ;;  %s1323_s30 = sadd.s32 4294967295, %s1247_s29   ;;  %s1247_s29 = sphi %s1302_s29, %s31_s29   ;;  %s1243_s28 = sphi %s1300_s28, %s1614_s28   ;;  %s1239_s27 = sphi %s1298_s27, %s1613_s27   ;;  %s1235_s26 = sphi %s1296_s26, %s1617_s26   ;;  %s1231_s25 = sphi %s1294_s25, %s1616_s25   ;;  %s1227_s24 = sphi %s1292_s24, %s1615_s24  }
   0xf   : > { %1592 = sst [smem:[#allocation20_spill]] %s1243_s28  ;;  %s1579_s8 = sadd.s32 4294967294, %s1247_s29  }
  0x10   : > { %1593 = sst [smem:[#allocation21_spill]] %s1247_s29  ;;  %s43_s9 = sadd.s32 1, %s1243_s28 }
  0x11   : > { %s52_s10 = sadd.s32 1, %s1235_s26  ;;  %p45_p0 = scmp.ge.s32.totalorder %s43_s9, 2 }
  0x12   : > { %p59_p1 = scmp.ne.s32.totalorder %s1235_s26, %s1231_s25  ;;  %p60_p2 = scmp.eq.s32.totalorder %s1247_s29, 0 }
  0x13   : > { %p65_p3 = scmp.ne.s32.totalorder %s1231_s25, %s1227_s24  ;;  %s1619_s9 = smov (%p45_p0, %s43_s9), 0 }
  0x14   : > { %1594 = sst [smem:[#allocation22_spill]] %s1619_s9  ;;  %p1335_p4 = por %p60_p2, %p59_p1 }
  0x15   : > { %p189_p5 = scmp.eq.s32.totalorder %s1323_s30, 1  ;;  %s47_s12 = ssub.s32 %s1243_s28, %s1619_s9 }
  0x16   : > { %p195_p6 = scmp.eq.s32.totalorder %s1579_s8, 1  ;;  %p50_p7 = scmp.eq.s32.totalorder %s47_s12, 0 }
  0x17   : > { %p1344_p8 = por %p189_p5, %p59_p1  ;;  %p821_p10 = scmp.ge.s32.totalorder %s1247_s29, 2 }
  0x18   : > { %p1351_p9 = por %p195_p6, %p65_p3  ;;  %p920_p11 = scmp.lt.s32.totalorder %s1247_s29, 2 }
  0x19   : > { %s1596_s13 = scalar_select %p1344_p8, 1, 0 }
  0x1a   : > { %s1598_s14 = scalar_select %p1351_p9, 1, 0 }
  0x1b   : > { %1597 = sst [smem:[#allocation23_spill]] %s1596_s13  ;;  %s1580_s16 = sand.u32 1, %s1235_s26  }
  0x1c   : > { %1599 = sst [smem:[#allocation24_spill]] %s1598_s14  ;;  %s1362_s17 = sshll.u32 %s1243_s28, 3 }
  0x1d   : > { %s1356_s15 = scalar_select %p50_p7, %s1235_s26, %s52_s10  }
  0x1e   : > { %s1366_s18 = sshll.u32 %s1580_s16, 3  ;;  %p1370_p12 = pnand %p920_p11, %p1335_p4 }
  0x1f   : > { %1600 = sst [smem:[#allocation25_spill]] %s1356_s15  ;;  %s308_s20 = sand.u32 1, %s1247_s29  }
  0x20   : > { %s1602_s1 = sld [smem:[#allocation26_spill]]  ;;  %s312_s10 = scalar_lea.vmem [#allocation5], %s1366_s18 }
  0x21   : > { %s321_s12 = sshll.u32 %s312_s10, 4  ;;  %s1380_s16 = scalar_lea.sflag [#allocation6], %s308_s20  ;;  %s322_s12 = int_to_ptr.vmem [resolvable:$true] %s321_s12 }
  0x22   : > { %p66_p13 = scmp.eq.s32.totalorder %s1323_s30, 0  ;;  %p819_p0 = scmp.ge.s32.totalorder %s1247_s29, 1 }
  0x23   : > { %p258_p1 = scmp.lt.s32.totalorder %s1247_s29, 3  ;;  %s1604_s3 = sld [smem:[#allocation27_spill]] }
  0x24   : > { %p1393_p2 = por %p66_p13, %p65_p3  ;;  %s297_s22 = scalar_lea.hbm %s1571_s0, %s1362_s17 }
  0x25   : > { %p1400_p4 = pnand %p819_p0, %p258_p1  ;;  %s1251_s9 = smov 4  }
  0x26   : > { %s317_s23 = scalar_lea.hbm %s1602_s1, %s1362_s17  ;;  %s299_s1 = sshll.u32 %s297_s22, 4  ;;  %s300_s1 = int_to_ptr.hbm [resolvable:$true] %s299_s1 }
  0x27   : > { %s319_s8 = sshll.u32 %s317_s23, 4  ;;  %p895_p5 = pneg %p1400_p4  ;;  %s320_s8 = int_to_ptr.hbm [resolvable:$true] %s319_s8 }
  0x28   : > { %905 = dma.hbm_to_vmem [thread:$0]  (!%p1370_p12), %s320_s8, 128, %s322_s12, %s1380_s16  }
  0x29   : > { %s269_s23 = sshll.u32 %s1604_s3, 4  ;;  %s1249_s8 = smov [#allocation8]   ;;  %s270_s23 = int_to_ptr.hbm [resolvable:$true] %s269_s23 }
  0x2a   : > { %s271_s10 = sshll.u32 %s1249_s8, 4  ;;  %p896_p3 = pnand %p895_p5, %p66_p13  ;;  %s272_s10 = int_to_ptr.vmem [resolvable:$true] %s271_s10 }
  0x2b   : > { %s1250_s3 = smov 64   ;;  %s292_s28 = scalar_lea.vmem [#allocation2], %s1366_s18 }
  0x2c   : > { %898 = dma.hbm_to_vmem [thread:$0]  (!%p896_p3), %s270_s23, 768, %s272_s10, [#allocation9], %s1250_s3, %s1250_s3, %s1251_s9  }
  0x2d   : > { %s301_s15 = sshll.u32 %s292_s28, 4  ;;  %s1606_s29 = sand.u32 1, %s1235_s26   ;;  %s302_s15 = int_to_ptr.vmem [resolvable:$true] %s301_s15 }
  0x2e   : > { %s289_s14 = scalar_lea.sflag [#allocation3], %s1606_s29  ;;  %s337_s13 = scalar_lea.hbm %s1573_s2, %s1362_s17 }
  0x2f   : > { %902 = dma.hbm_to_vmem [thread:$0]  (!%p1370_p12), %s300_s1, 128, %s302_s15, %s289_s14  }
  0x30   : > { %s332_s12 = scalar_lea.vmem [#allocation7], %s1366_s18  ;;  %s339_s22 = sshll.u32 %s337_s13, 4  ;;  %s340_s22 = int_to_ptr.hbm [resolvable:$true] %s339_s22 }
  0x31   : > { %s341_s21 = sshll.u32 %s332_s12, 4  ;;  %350 = sbr.rel (%p1400_p4) target bundleno = 231 (0xe7), region = 40  ;;  %s342_s21 = int_to_ptr.vmem [resolvable:$true] %s341_s21 }
  0x32   : > { %908 = dma.hbm_to_vmem [thread:$0]  (!%p1370_p12), %s340_s22, 128, %s342_s21, %s1380_s16  }
  0x33   : > { %s1428_s3 = sand.u32 (!%p1400_p4), 1, %s1231_s25  }
  0x34   : > { %s829_s1 = sshll.u32 (!%p1400_p4), %s1428_s3, 3  ;;  %s353_s28 = scalar_lea.sflag (!%p1400_p4), [#allocation3], %s1428_s3 }
  0x35   : > { %s356_s24 = scalar_lea.vmem (!%p1400_p4), [#allocation2], %s829_s1 }
  0x36   : > { %1206 = dma.done.wait (%p1393_p2), %s353_s28, 128  }
  0x37   : > { %1208 = vsyncadd (%p1393_p2), %s353_s28, 4294967168  ;;  %s362_s29 = sand.u32 1, %s1323_s30   ;;  %s366_s13 = scalar_lea.vmem [#allocation5], %s829_s1 }
  0x38   : > { %s363_s9 = scalar_lea.sflag [#allocation6], %s362_s29 }
  0x39   : > { %1210 = dma.done.wait (%p1393_p2), %s363_s9, 256  }
  0x3a   : > { %1212 = vsyncadd (%p1393_p2), %s363_s9, 4294967040  ;;  %s376_s14 = scalar_lea.vmem [#allocation7], %s829_s1 }
  0x3b   : > { %1214 = dma.done.wait (%p66_p13), [#allocation9], 768  }
  0x3c   : > { %1216 = vsyncadd (%p66_p13), [#allocation9], 4294966528  ;;  %v874_v0 = vld [vmem:[#allocation8 + $0x8] sm:$0xff]  ;;  %v876_v1 = vld [vmem:[#allocation8 + $0x18] sm:$0xff]  ;;  %vm456_vm0 = vcmask 261120   ;;  %s1448_s15 = sshll.u32 %s1428_s3, 2 }
  0x3d   : > { %v878_v2 = vld [vmem:[#allocation8 + $0x28] sm:$0xff]  ;;  %v873_v3 = vld [vmem:[#allocation8] sm:$0xff]  ;;  %v875_v4 = vld [vmem:[#allocation8 + $0x10] sm:$0xff]  ;;  %466 = vmatpush.bf16.msra.mxu0 %v874_v0  ;;  %509 = vmatpush.bf16.msra.mxu1 %v876_v1  ;;  %s868_s16 = sshll.u32 %s1239_s27, 2  ;;  %s425_s8 = scalar_lea.vmem [#allocation11], %s1448_s15  ;;  %vm474_vm1 = vcmask 257024  }
  0x3e   : > { %v877_v5 = vld [vmem:[#allocation8 + $0x20] sm:$0xff]  ;;  %v434_v6 = vld [vmem:[%s356_s24] sm:$0xff]  ;;  %551 = vmatpush.bf16.msra.mxu2 %v878_v2  ;;  %s597_s10 = scalar_lea.hbm %s1577_s6, %s868_s16  ;;  %s1461_s12 = sshll.u32 %s425_s8, 4  ;;  %s600_s12 = int_to_ptr.vmem [resolvable:$true] %s1461_s12 }
  0x3f   : > { %v476_v7 = vld [vmem:[%s366_s13] sm:$0xff]  ;;  %v518_v8 = vld [vmem:[%s376_s14] sm:$0xff]  ;;  %v435_v9 = vpack.c.bf16 %v434_v6, %v434_v6  ;;  %s582_s27 = scalar_lea.hbm %s1576_s5, %s868_s16  ;;  %s1467_s1 = sshll.u32 %s597_s10, 4  ;;  %s602_s1 = int_to_ptr.hbm [resolvable:$true] %s1467_s1 }
  0x40   : > { %v477_v10 = vpack.c.bf16 %v476_v7, %v476_v7  ;;  %v519_v11 = vpack.c.bf16 %v518_v8, %v518_v8  ;;  %v974_v12 = vld [vmem:[%s1575_s4] ss:$0 sm:$0xff]  ;;  %v975_v13 = vld [vmem:[%s1575_s4 + $0x1] ss:$0 sm:$0xff]  ;;  %s418_s28 = scalar_lea.vmem [#allocation10], %s1448_s15  ;;  %s1474_s9 = sshll.u32 %s582_s27, 4  ;;  %s587_s9 = int_to_ptr.hbm [resolvable:$true] %s1474_s9 }
  0x41   : > { %467 = vmatpush.bf16.msra.mxu0 %v873_v3  ;;  %510 = vmatpush.bf16.msra.mxu1 %v875_v4  ;;  %s1472_s24 = sshll.u32 %s418_s28, 4  ;;  %s612_s17 = scalar_lea.hbm %s1578_s7, %s868_s16  ;;  %v976_v20 = vld [vmem:[%s1575_s4 + $0x2] ss:$0 sm:$0xff]  ;;  %s585_s24 = int_to_ptr.vmem [resolvable:$true] %s1472_s24 }
  0x42   : > { %552 = vmatpush.bf16.msra.mxu2 %v877_v5  ;;  %s432_s23 = scalar_lea.vmem [#allocation13], %s1448_s15  ;;  %s1491_s10 = sshll.u32 %s612_s17, 4  ;;  %s617_s10 = int_to_ptr.hbm [resolvable:$true] %s1491_s10 }
  0x43   : > { %s1489_s20 = sshll.u32 %s432_s23, 4  ;;  %s1495_s16 = scalar_lea.sflag [#allocation12], %s362_s29  ;;  %s615_s20 = int_to_ptr.vmem [resolvable:$true] %s1489_s20 }
  0x44   : > { %844 = vmatmul.msk.bf16.vlgmr.msra.gmra.mxu0 %vm456_vm0, %v435_v9  ;;  %854 = vmatmul.msk.bf16.vlgmr.msra.gmra.mxu1 %vm456_vm0, %v477_v10  ;;  %s1111_s21 = sshra.s32 %s602_s1, 4  ;;  %s1112_s21 = int_to_ptr.hbm [resolvable:$true] %s1111_s21 }
  0x45   : > { %864 = vmatmul.msk.bf16.vlgmr.msra.gmra.mxu2 %vm456_vm0, %v519_v11  ;;  %s1113_s22 = scalar_lea.hbm %s1112_s21, 4  ;;  %p1118_p12 = scmp.lt.s32.totalorder %s1112_s21, %s1577_s6 }
  0x46   : > { %p1114_p6 = scmp.ne.s32.totalorder %s1112_s21, %s1113_s22 }
  0x48   : > { %p1115_p7 = pnand %p1114_p6, %p1344_p8 }
  0x4a   : > { %p1116_p11 = pneg %p1115_p7 }
  0xc1   : > { %v469_v14 = vpop.f32.mrf.mxu0  ;;  %v512_v15 = vpop.f32.mrf.mxu1 }
  0xc2   : > { %v470_v16 = vadd.f32 %v974_v12, %v469_v14  ;;  %v513_v17 = vadd.f32 %v975_v13, %v512_v15 }
  0xc4   : > { %v473_v18 = vpack.c.bf16 %v470_v16, %v470_v16  ;;  %v516_v19 = vpack.c.bf16 %v513_v17, %v513_v17 }
  0xc6   : > { %517 = vst.msk [vmem:[%s425_s8] sm:$0xf] %vm474_vm1, %v516_v19  ;;  %s1117_s8 = scalar_lea.hbm %s1577_s6, 8 }
  0xc7   : > { %p1119_p13 = scmp.lt.s32.totalorder %s1117_s8, %s1113_s22 }
  0xc9   : > { %p1120_p0 = por %p1119_p13, %p1118_p12 }
  0xcb   : > { %p1121_p1 = pnand %p1120_p0, %p1116_p11 }
  0xcd   : > { %1124 = shalt.err (!%p1121_p1)
}
  0xce   : > { %890 = dma.vmem_to_hbm [thread:$0]  (%p1344_p8), %s600_s12, 64, %s602_s1, %s1495_s16   ;;  %475 = vst.msk [vmem:[%s418_s28] sm:$0xf] %vm474_vm1, %v473_v18  ;;  %v554_v21 = vpop.f32.mrf.mxu2 }
  0xcf   : > { %s561_s30 = scalar_lea.sflag [#allocation4], %s1428_s3  ;;  %s1139_s29 = sshra.s32 %s587_s9, 4  ;;  %s1140_s29 = int_to_ptr.hbm [resolvable:$true] %s1139_s29 }
  0xd0   : > { %s1141_s17 = scalar_lea.hbm %s1140_s29, 4  ;;  %s1145_s22 = scalar_lea.hbm %s1576_s5, 8 }
  0xd1   : > { %p1142_p2 = scmp.ne.s32.totalorder %s1140_s29, %s1141_s17  ;;  %p1146_p3 = scmp.lt.s32.totalorder %s1140_s29, %s1576_s5 }
  0xd2   : > { %p1147_p6 = scmp.lt.s32.totalorder %s1145_s22, %s1141_s17 }
  0xd3   : > { %p1143_p4 = pnand %p1142_p2, %p1344_p8 }
  0xd4   : > { %p1148_p7 = por %p1147_p6, %p1146_p3 }
  0xd5   : > { %p1144_p5 = pneg %p1143_p4 }
  0xd7   : > { %p1149_p11 = pnand %p1148_p7, %p1144_p5 }
  0xd9   : > { %1152 = shalt.err (!%p1149_p11)
}
  0xda   : > { %889 = dma.vmem_to_hbm [thread:$0]  (%p1344_p8), %s585_s24, 64, %s587_s9, %s561_s30   ;;  %v555_v22 = vadd.f32 %v976_v20, %v554_v21  ;;  %v471_v23 = vpop.f32.mrf.mxu0  ;;  %v514_v24 = vpop.f32.mrf.mxu1 }
  0xdb   : > { %s1167_s3 = sshra.s32 %s617_s10, 4  ;;  %s1173_s24 = scalar_lea.hbm %s1578_s7, 8  ;;  %s1168_s3 = int_to_ptr.hbm [resolvable:$true] %s1167_s3 }
  0xdc   : > { %v558_v25 = vpack.c.bf16 %v555_v22, %v555_v22  ;;  %s1169_s12 = scalar_lea.hbm %s1168_s3, 4  ;;  %p1174_p1 = scmp.lt.s32.totalorder %s1168_s3, %s1578_s7 }
  0xdd   : > { %p1170_p12 = scmp.ne.s32.totalorder %s1168_s3, %s1169_s12  ;;  %p1175_p2 = scmp.lt.s32.totalorder %s1173_s24, %s1169_s12 }
  0xde   : > { %559 = vst.msk [vmem:[%s432_s23] sm:$0xf] %vm474_vm1, %v558_v25 }
  0xdf   : > { %p1171_p13 = pnand %p1170_p12, %p1344_p8  ;;  %p1176_p4 = por %p1175_p2, %p1174_p1 }
  0xe1   : > { %p1172_p0 = pneg %p1171_p13 }
  0xe3   : > { %p1177_p5 = pnand %p1176_p4, %p1172_p0 }
  0xe5   : > { %1180 = shalt.err (!%p1177_p5)
}
  0xe6   : > { %891 = dma.vmem_to_hbm [thread:$0]  (%p1344_p8), %s615_s20, 64, %s617_s10, %s1495_s16   ;;  %v556_v26 = vpop.f32.mrf.mxu2 }
  0xe7 PF: > { %s1608_s15 = sld [smem:[#allocation19_spill]]  ;;  %p910_p3 = pnand %p821_p10, %p1351_p9 }
  0xe8   : > { %s1610_s14 = sld [smem:[#allocation21_spill]] }
  0xe9   : > { %p911_p6 = pneg %p910_p3 }
  0xed   : > { %s628_s19 = sand.u32 1, %s1608_s15  }
  0xee   : > { %s629_s30 = scalar_lea.sflag [#allocation4], %s628_s19 }
  0xef   : > { %1218 = dma.done.wait (%p911_p6), %s629_s30, 64  }
  0xf0   : > { %1220 = vsyncadd (%p911_p6), %s629_s30, 4294967232  ;;  %s1611_s29 = sadd.s32 4294967294, %s1610_s14  }
  0xf1   : > { %s638_s17 = sand.u32 1, %s1611_s29  }
  0xf2   : > { %s639_s11 = scalar_lea.sflag [#allocation12], %s638_s17 }
  0xf3   : > { %1222 = dma.done.wait (%p911_p6), %s639_s11, 128  }
  0xf4   : > { %1224 = vsyncadd (%p911_p6), %s639_s11, 4294967168  ;;  %s31_s29 = sadd.s32 1, %s1610_s14   ;;  %s1612_s18 = sld [smem:[#allocation25_spill]] }
  0xf5   : > { %p28_p8 = scmp.ge.s32.totalorder %s31_s29, 4   ;;  %s1613_s27 = sld [smem:[#allocation20_spill]] }
  0xf6   : > { %s1614_s28 = sld [smem:[#allocation22_spill]]  ;;  %s1615_s24 = smov %s1231_s25 }
  0xf7   : > { %s1616_s25 = smov %s1235_s26  ;;  %30 = sbr.rel (!%p28_p8) target bundleno = 14 (0xe), region = 149 }
  0xfa   : > { %s1617_s26 = smov %s1612_s18 }
  0xfc   :  { %655 = vsyncpa [#allocation3], 1 }
  0xfd   :  { %657 = vsyncpa [#allocation3 + $0x1], 1 }
  0xfe   :  { %658 = vsyncpa [#allocation6], 1 }
  0xff   :  { %660 = vsyncpa [#allocation6 + $0x1], 1 }
 0x100   :  { %661 = vsyncpa [#allocation9], 1 }
 0x101   :  { %662 = vsyncpa [#allocation4], 1 }
 0x102   :  { %664 = vsyncpa [#allocation4 + $0x1], 1 }
 0x103   :  { %665 = vsyncpa [#allocation12], 1 }
 0x104   :  { %667 = vsyncpa [#allocation12 + $0x1], 1 }

</bundles_post_ra>
